<compile_context>
chip_gen: v7x
topology: tpu7x:2x2x1
jax: 0.10.0
libtpu: 0.0.40
codegen_flags: <defaults>
</compile_context>

<pallas_src>
import functools

import jax
import jax.numpy as jnp
from jax.experimental import pallas as pl
from jax.experimental.pallas import tpu as pltpu


# Leading "parallel" grid axis.  On v7x (2 TCs/chip) Mosaic shards it across
# both cores; on v5e/v6e (1 TC) it merely adds one extra tiny output block.
_NUM_SHARDS = 2


# -----------------------------------------------------------------------------
# Kernel: per-chunk partial moments, accumulated per tensor-id.
# -----------------------------------------------------------------------------
def _partial_moments_kernel(tid_ref, x_ref, sum_ref, sq_ref):
    """Accumulate sum(x) and sum(x*x) partials for one chunk.

    tid_ref : SMEM (n_total_chunks,) int32 -- tensor id of each chunk (scalar prefetch)
    x_ref   : VMEM (tr, 128) chunk of the concatenated slab (native dtype)
    sum_ref : VMEM (1, 6, 8, 128) f32 output block (resident across chunk axis)
    sq_ref  : VMEM (1, 6, 8, 128) f32 output block
    """
    p = pl.program_id(0)   # shard (parallel)
    k = pl.program_id(1)   # chunk within shard (arbitrary / reduction)

    @pl.when(k == 0)
    def _init():
        sum_ref[...] = jnp.zeros_like(sum_ref)
        sq_ref[...] = jnp.zeros_like(sq_ref)

    tid = tid_ref[p * pl.num_programs(1) + k]

    x = x_ref[...].astype(jnp.float32)                 # (tr, 128)
    # Split rows into (8,128) vreg tiles; summing over axis 0 is pure VALU
    # vreg adds (no cross-sublane XLU work in the hot loop).
    xr = x.reshape(x.shape[0] // 8, 8, 128)
    part = jnp.sum(xr, axis=0)                         # (8, 128)
    part_sq = jnp.sum(xr * xr, axis=0)                 # (8, 128)

    sum_ref[0, tid] = sum_ref[0, tid] + part
    sq_ref[0, tid] = sq_ref[0, tid] + part_sq


# -----------------------------------------------------------------------------
# Slab construction: per-tensor padding only, concatenated row-wise.
# -----------------------------------------------------------------------------
def _build_slab(flats, dtype, tr):
    """Concatenate flattened tensors into one (rows, 128) slab.

    Each tensor is zero-padded only to its OWN multiple of tr*128 elements
    (no pad-to-global-max).  Returns (slab, per-chunk tensor-id table,
    total chunk count padded to a multiple of _NUM_SHARDS).
    """
    chunk_elems = tr * 128
    counts = [int(f.shape[0]) for f in flats]
    chunks = [max(1, -(-c // chunk_elems)) for c in counts]
    total_chunks = sum(chunks)
    padded_chunks = -(-total_chunks // _NUM_SHARDS) * _NUM_SHARDS
    dummy_chunks = padded_chunks - total_chunks

    pieces = []
    tids = []
    for i, (f, c, nchunk) in enumerate(zip(flats, counts, chunks)):
        pad = nchunk * chunk_elems - c
        if i == len(flats) - 1:
            pad += dummy_chunks * chunk_elems          # trailing dummy chunks
        pieces.append(jnp.pad(f.astype(dtype), (0, pad)))
        tids.extend([i] * nchunk)
    # Dummy chunks are all zeros -> contribute nothing regardless of slot.
    tids.extend([0] * dummy_chunks)

    slab = jnp.concatenate(pieces).reshape(padded_chunks * tr, 128)
    tid_arr = jnp.asarray(tids, jnp.int32)
    return slab, tid_arr, padded_chunks


# -----------------------------------------------------------------------------
# Forward wrapper
# -----------------------------------------------------------------------------
@functools.partial(jax.jit, static_argnames=("chunk_rows",))
def loss_con2_forward(y_pos_pred, y_neg_pred,
                      y_pos_g_pos, y_pos_g_neg,
                      y_neg_g_pos, y_neg_g_neg,
                      lam, alp, aa, cc, a, b,
                      *, chunk_rows=1024):
    # chunk_rows=1024 -> 512 KiB f32 block, ~1 MiB double-buffered, plus two
    # 24 KiB accumulator blocks: far below default scoped VMEM on v5e (16 MiB),
    # v6e (32 MiB) and v7x (32 MiB of 64 MiB physical).
    tensors = (y_pos_pred, y_neg_pred, y_pos_g_pos, y_pos_g_neg,
               y_neg_g_pos, y_neg_g_neg)
    flats = [jnp.reshape(t, (-1,)) for t in tensors]
    counts = [int(f.shape[0]) for f in flats]
    dtype = jnp.result_type(*[f.dtype for f in flats])

    # Chunk rows: multiple of 8, clipped down for small inputs.
    rows_needed = max(8, -(-max(counts) // 128))
    rows_needed = -(-rows_needed // 8) * 8
    tr = max(8, min(int(chunk_rows), rows_needed))
    tr = -(-tr // 8) * 8

    slab, tid_arr, padded_chunks = _build_slab(flats, dtype, tr)
    nk = padded_chunks // _NUM_SHARDS

    sum_out, sq_out = pl.pallas_call(
        _partial_moments_kernel,
        out_shape=(
            jax.ShapeDtypeStruct((_NUM_SHARDS, 6, 8, 128), jnp.float32),
            jax.ShapeDtypeStruct((_NUM_SHARDS, 6, 8, 128), jnp.float32),
        ),
        grid_spec=pltpu.PrefetchScalarGridSpec(
            num_scalar_prefetch=1,
            grid=(_NUM_SHARDS, nk),
            in_specs=[
                pl.BlockSpec((tr, 128), lambda p, k, tid: (p * nk + k, 0)),
            ],
            out_specs=[
                pl.BlockSpec((1, 6, 8, 128), lambda p, k, tid: (p, 0, 0, 0)),
                pl.BlockSpec((1, 6, 8, 128), lambda p, k, tid: (p, 0, 0, 0)),
            ],
        ),
        compiler_params=pltpu.CompilerParams(
            dimension_semantics=("parallel", "arbitrary")),
    )(tid_arr, slab)

    # ---- Finalize (trivial scalar work) in plain JAX -----------------------
    sums = jnp.sum(sum_out, axis=(0, 2, 3))     # (6,)  sum(x)   per tensor
    sqs = jnp.sum(sq_out, axis=(0, 2, 3))       # (6,)  sum(x^2) per tensor

    inv_n = jnp.asarray([1.0 / max(c, 1) for c in counts], jnp.float32)
    means = sums * inv_n                        # E[x]
    ex2 = sqs * inv_n                           # E[x^2]

    a = jnp.reshape(a, (5,)).astype(jnp.float32)
    b = jnp.reshape(b, (5,)).astype(jnp.float32)
    lam = jnp.reshape(lam, (-1,)).astype(jnp.float32)
    alp = jnp.reshape(alp, (-1,)).astype(jnp.float32)
    aa = jnp.asarray(aa, jnp.float32)
    cc = jnp.asarray(cc, jnp.float32)

    def term(ix, iy, av, bv, alpha, sign):
        # sign = -1.0 -> single_loss ; sign = +1.0 -> single_cons
        msd_x = ex2[ix] - 2.0 * av * means[ix] + av * av   # mean((x - a)^2)
        msd_y = ex2[iy] - 2.0 * bv * means[iy] + bv * bv   # mean((y - b)^2)
        return aa * (cc * cc + msd_x + msd_y
                     + sign * 2.0 * (cc + alpha) * (means[ix] - means[iy]))

    # Stack order: 0=y_pos_pred 1=y_neg_pred 2=y_pos_g_pos
    #              3=y_pos_g_neg 4=y_neg_g_pos 5=y_neg_g_neg
    loss1 = term(0, 1, a[0], b[0], alp[0], -1.0)
    loss2 = (term(3, 4, a[1], b[1], alp[1], 1.0)
             + term(5, 2, a[2], b[2], alp[2], 1.0))
    loss3 = (term(2, 5, a[3], b[3], alp[3], 1.0)
             + term(4, 3, a[4], b[4], alp[4], 1.0))
    return lam[0] * loss1 + lam[1] * loss2 + lam[2] * loss3


# -----------------------------------------------------------------------------
# Pure-JAX reference (mirrors the PyTorch module)
# -----------------------------------------------------------------------------
def _reference(y_pos_pred, y_neg_pred, y_pos_g_pos, y_pos_g_neg,
               y_neg_g_pos, y_neg_g_neg, lam, alp, aa, cc, a, b):
    a = jnp.reshape(a, (5,))
    b = jnp.reshape(b, (5,))

    def single(x, y, av, bv, alpha, sign):
        x = jnp.reshape(x, (-1, 1)).astype(jnp.float32)
        y = jnp.reshape(y, (-1, 1)).astype(jnp.float32)
        return aa * (cc ** 2
                     + jnp.mean((x - av) ** 2) + jnp.mean((y - bv) ** 2)
                     + sign * 2.0 * (cc + alpha) * (jnp.mean(x) - jnp.mean(y)))

    loss1 = single(y_pos_pred, y_neg_pred, a[0], b[0], alp[0], -1.0)
    loss2 = (single(y_pos_g_neg, y_neg_g_pos, a[1], b[1], alp[1], 1.0)
             + single(y_neg_g_neg, y_pos_g_pos, a[2], b[2], alp[2], 1.0))
    loss3 = (single(y_pos_g_pos, y_neg_g_neg, a[3], b[3], alp[3], 1.0)
             + single(y_neg_g_pos, y_pos_g_neg, a[4], b[4], alp[4], 1.0))
    return lam[0] * loss1 + lam[1] * loss2 + lam[2] * loss3


# -----------------------------------------------------------------------------
# Test harness
# -----------------------------------------------------------------------------
if __name__ == "__main__":
    key = jax.random.PRNGKey(0)
    ks = jax.random.split(key, 8)

    # Small, deterministic inputs with different lengths per tensor
    # (prediction scores; the module reshapes them to (-1, 1) internally).
    y_pos_pred  = jax.random.normal(ks[0], (2500, 1), jnp.float32)
    y_neg_pred  = jax.random.normal(ks[1], (1700, 1), jnp.float32)
    y_pos_g_pos = jax.random.normal(ks[2], (2100,),   jnp.float32)
    y_pos_g_neg = jax.random.normal(ks[3], (1300,),   jnp.float32)
    y_neg_g_pos = jax.random.normal(ks[4], (900,),    jnp.float32)
    y_neg_g_neg = jax.random.normal(ks[5], (3100,),   jnp.float32)

    lam = jnp.array([0.5, 0.3, 0.2], jnp.float32)
    alp = jax.random.uniform(ks[6], (5,), jnp.float32)
    aa = jnp.float32(1.5)
    cc = jnp.float32(0.7)

    # Module parameters: self.a, self.b initialized to zeros((5,1)).
    a_param = jnp.zeros((5, 1), jnp.float32)
    b_param = jnp.zeros((5, 1), jnp.float32)

    ref = _reference(y_pos_pred, y_neg_pred, y_pos_g_pos, y_pos_g_neg,
                     y_neg_g_pos, y_neg_g_neg, lam, alp, aa, cc,
                     a_param, b_param)

    # Default chunking (one chunk per tensor at this size).
    loss = loss_con2_forward(y_pos_pred, y_neg_pred,
                             y_pos_g_pos, y_pos_g_neg,
                             y_neg_g_pos, y_neg_g_neg,
                             lam, alp, aa, cc, a_param, b_param)
    loss = jax.block_until_ready(loss)
    assert jnp.allclose(loss, ref, rtol=1e-5, atol=1e-4), (loss, ref)

    # Small chunks -> exercises multi-chunk accumulation, tensor-id switching
    # and the dummy-chunk padding path.
    loss_chunked = loss_con2_forward(y_pos_pred, y_neg_pred,
                                     y_pos_g_pos, y_pos_g_neg,
                                     y_neg_g_pos, y_neg_g_neg,
                                     lam, alp, aa, cc, a_param, b_param,
                                     chunk_rows=8)
    loss_chunked = jax.block_until_ready(loss_chunked)
    assert jnp.allclose(loss_chunked, ref, rtol=1e-5, atol=1e-4), (loss_chunked, ref)

    print("KERNEL_OK")
</pallas_src>

<mosaic_0001>
module attributes {stable_mosaic.version = 11 : i64} {
  func.func @_partial_moments_kernel(%arg0: i32, %arg1: i32, %arg2: memref<6xi32, #tpu.memory_space<smem>>, %arg3: memref<32x128xf32, #tpu.memory_space<vmem>>, %arg4: memref<1x6x8x128xf32, #tpu.memory_space<vmem>>, %arg5: memref<1x6x8x128xf32, #tpu.memory_space<vmem>>) attributes {dimension_semantics = [#tpu.dimension_semantics<parallel>, #tpu.dimension_semantics<arbitrary>], iteration_bounds = array<i64: 2, 3>, scalar_prefetch = 1 : i64, scratch_operands = 0 : i64, tpu.core_type = #tpu.core_type<tc>, window_params = [{transform_indices = @transform_0, window_bounds = array<i64: 32, 128>}, {transform_indices = @transform_1, window_bounds = array<i64: 1, 6, 8, 128>}, {transform_indices = @transform_2, window_bounds = array<i64: 1, 6, 8, 128>}]} {
    %c0_i32 = arith.constant 0 : i32
    %0 = arith.cmpi eq, %arg1, %c0_i32 : i32
    %1 = arith.extui %0 : i1 to i32
    %c0_i32_0 = arith.constant 0 : i32
    %2 = arith.cmpi ne, %1, %c0_i32_0 : i32
    scf.if %2 {
      %cst_15 = arith.constant 0.000000e+00 : f32
      %28 = vector.broadcast %cst_15 : f32 to vector<1x6x8x128xf32>
      %c0_16 = arith.constant 0 : index
      %c0_17 = arith.constant 0 : index
      %c0_18 = arith.constant 0 : index
      %c0_19 = arith.constant 0 : index
      %29 = vector.load %arg4[%c0_16, %c0_17, %c0_18, %c0_19] : memref<1x6x8x128xf32, #tpu.memory_space<vmem>>, vector<1x6x8x128xf32>
      tpu.vector_store %arg4[%c0_16, %c0_17, %c0_18, %c0_19], %28 {strides = array<i32>} : memref<1x6x8x128xf32, #tpu.memory_space<vmem>>, vector<1x6x8x128xf32>,
      %cst_20 = arith.constant 0.000000e+00 : f32
      %30 = vector.broadcast %cst_20 : f32 to vector<1x6x8x128xf32>
      %c0_21 = arith.constant 0 : index
      %c0_22 = arith.constant 0 : index
      %c0_23 = arith.constant 0 : index
      %c0_24 = arith.constant 0 : index
      %31 = vector.load %arg5[%c0_21, %c0_22, %c0_23, %c0_24] : memref<1x6x8x128xf32, #tpu.memory_space<vmem>>, vector<1x6x8x128xf32>
      tpu.vector_store %arg5[%c0_21, %c0_22, %c0_23, %c0_24], %30 {strides = array<i32>} : memref<1x6x8x128xf32, #tpu.memory_space<vmem>>, vector<1x6x8x128xf32>,
    } else {
    }
    %c3_i32 = arith.constant 3 : i32
    %3 = arith.muli %arg0, %c3_i32 : i32
    %4 = arith.addi %3, %arg1 : i32
    %5 = arith.index_cast %4 : i32 to index
    %6 = memref.load %arg2[%5] : memref<6xi32, #tpu.memory_space<smem>>
    %c0 = arith.constant 0 : index
    %c0_1 = arith.constant 0 : index
    %7 = vector.load %arg3[%c0, %c0_1] : memref<32x128xf32, #tpu.memory_space<vmem>>, vector<32x128xf32>
    %8 = vector.shape_cast %7 : vector<32x128xf32> to vector<4x8x128xf32>
    %cst = arith.constant dense<0.000000e+00> : vector<8x128xf32>
    %9 = vector.multi_reduction <add>, %8, %cst [0] : vector<4x8x128xf32> to vector<8x128xf32>
    %10 = arith.mulf %8, %8 : vector<4x8x128xf32>
    %cst_2 = arith.constant dense<0.000000e+00> : vector<8x128xf32>
    %11 = vector.multi_reduction <add>, %10, %cst_2 [0] : vector<4x8x128xf32> to vector<8x128xf32>
    %c0_3 = arith.constant 0 : index
    %12 = arith.index_cast %6 : i32 to index
    %c0_4 = arith.constant 0 : index
    %c0_5 = arith.constant 0 : index
    %13 = vector.load %arg4[%c0_3, %12, %c0_4, %c0_5] : memref<1x6x8x128xf32, #tpu.memory_space<vmem>>, vector<1x1x8x128xf32>
    %14 = vector.shape_cast %13 : vector<1x1x8x128xf32> to vector<8x128xf32>
    %15 = arith.addf %14, %9 : vector<8x128xf32>
    %c0_6 = arith.constant 0 : index
    %16 = arith.index_cast %6 : i32 to index
    %c0_7 = arith.constant 0 : index
    %c0_8 = arith.constant 0 : index
    %17 = vector.load %arg4[%c0_6, %16, %c0_7, %c0_8] : memref<1x6x8x128xf32, #tpu.memory_space<vmem>>, vector<1x1x8x128xf32>
    %18 = vector.shape_cast %17 : vector<1x1x8x128xf32> to vector<8x128xf32>
    %19 = vector.shape_cast %15 : vector<8x128xf32> to vector<1x1x8x128xf32>
    tpu.vector_store %arg4[%c0_6, %16, %c0_7, %c0_8], %19 {strides = array<i32>} : memref<1x6x8x128xf32, #tpu.memory_space<vmem>>, vector<1x1x8x128xf32>,
    %c0_9 = arith.constant 0 : index
    %20 = arith.index_cast %6 : i32 to index
    %c0_10 = arith.constant 0 : index
    %c0_11 = arith.constant 0 : index
    %21 = vector.load %arg5[%c0_9, %20, %c0_10, %c0_11] : memref<1x6x8x128xf32, #tpu.memory_space<vmem>>, vector<1x1x8x128xf32>
    %22 = vector.shape_cast %21 : vector<1x1x8x128xf32> to vector<8x128xf32>
    %23 = arith.addf %22, %11 : vector<8x128xf32>
    %c0_12 = arith.constant 0 : index
    %24 = arith.index_cast %6 : i32 to index
    %c0_13 = arith.constant 0 : index
    %c0_14 = arith.constant 0 : index
    %25 = vector.load %arg5[%c0_12, %24, %c0_13, %c0_14] : memref<1x6x8x128xf32, #tpu.memory_space<vmem>>, vector<1x1x8x128xf32>
    %26 = vector.shape_cast %25 : vector<1x1x8x128xf32> to vector<8x128xf32>
    %27 = vector.shape_cast %23 : vector<8x128xf32> to vector<1x1x8x128xf32>
    tpu.vector_store %arg5[%c0_12, %24, %c0_13, %c0_14], %27 {strides = array<i32>} : memref<1x6x8x128xf32, #tpu.memory_space<vmem>>, vector<1x1x8x128xf32>,
    return
  }
  func.func @transform_0(%arg0: i32, %arg1: i32, %arg2: memref<6xi32, #tpu.memory_space<smem>>) -> (i32, i32) {
    %c3_i32 = arith.constant 3 : i32
    %0 = arith.muli %arg0, %c3_i32 : i32
    %1 = arith.addi %0, %arg1 : i32
    %c0_i32 = arith.constant 0 : i32
    %c0_i32_0 = arith.constant 0 : i32
    return %1, %c0_i32 : i32, i32
  }
  func.func @transform_1(%arg0: i32, %arg1: i32, %arg2: memref<6xi32, #tpu.memory_space<smem>>) -> (i32, i32, i32, i32) {
    %c0_i32 = arith.constant 0 : i32
    %c0_i32_0 = arith.constant 0 : i32
    %c0_i32_1 = arith.constant 0 : i32
    %c0_i32_2 = arith.constant 0 : i32
    return %arg0, %c0_i32, %c0_i32_0, %c0_i32_1 : i32, i32, i32, i32
  }
  func.func @transform_2(%arg0: i32, %arg1: i32, %arg2: memref<6xi32, #tpu.memory_space<smem>>) -> (i32, i32, i32, i32) {
    %c0_i32 = arith.constant 0 : i32
    %c0_i32_0 = arith.constant 0 : i32
    %c0_i32_1 = arith.constant 0 : i32
    %c0_i32_2 = arith.constant 0 : i32
    return %arg0, %c0_i32, %c0_i32_0, %c0_i32_1 : i32, i32, i32, i32
  }
}

</mosaic_0001>

<bundles_post_ra>
// kernel: loss_con2_forward.1
= control target key start
LH: loop header
LB: loop body
LE: loop exit
PB: predicated region body
PF: predicated region fallthrough
CT: control target
= control target key end

     0   :  { %s544_s0 = inlined_call_operand.vmem [shape: s32[6], index: 0, kind: input, shape index: {}]   ;;  %s545_s1 = inlined_call_operand.vmem [shape: f32[192,128], index: 1, kind: input, shape index: {}]   ;;  %s546_s2 = inlined_call_operand.vmem [shape: f32[2,6,8,128], index: 2, kind: output, shape index: {0}]   ;;  %s547_s3 = inlined_call_operand.vmem [shape: f32[2,6,8,128], index: 3, kind: output, shape index: {1}]  }
   0x1   :  { %s9_s14 = sshll.u32 %s544_s0, 4  ;;  %s10_s14 = int_to_ptr.vmem [resolvable:$true] %s9_s14 }
   0x2   :  { %s393_s15 = scalar_lea.vmem %s10_s14, 16  ;;  %p398_p1 = scmp.lt.s32.totalorder %s10_s14, %s10_s14 }
   0x3   :  { %p394_p0 = scmp.ne.s32.totalorder %s10_s14, %s393_s15  ;;  %p399_p2 = scmp.lt.s32.totalorder %s393_s15, %s393_s15 }
   0x5   :  { %p400_p3 = por %p399_p2, %p398_p1 }
   0x7   :  { %p401_p4 = pnand %p400_p3, %p394_p0 }
   0x9   :  { %404 = shalt.err (!%p401_p4)  }
   0xa   :  { %s447_s16 = smov [#allocation3]  }
   0xb   :  { %12 = dma.vmem_to_smem %s10_s14, 16, %s447_s16, [#allocation2] }
   0xc   :  { %425 = dma.done.wait [#allocation2], 16 }
   0xd   :  { %426 = vsyncadd [#allocation2], 4294967280 }
   0xe   :  { %14 = sfence }
   0xf   :  { %s472_s17 = smov 0   ;;  %s474_s18 = smov 0  }
  0x10   :  { %s476_s19 = smov 0   ;;  %s478_s0 = smov 0  }
  0x11   :  { %s480_s20 = smov 0  }
  0x12 LB: > { %s29_s21 = sadd.s32 1, %s437_s19  ;;  %s32_s22 = sadd.s32 1, %s441_s0  ;;  %s445_s20 = sphi %s480_s20, %s20_s20   ;;  %s441_s0 = sphi %s478_s0, %s551_s0   ;;  %s437_s19 = sphi %s476_s19, %s550_s19   ;;  %s433_s18 = sphi %s474_s18, %s549_s18   ;;  %s429_s17 = sphi %s472_s17, %s548_s17  }
  0x13   : > { %p30_p5 = scmp.ge.s32.totalorder %s29_s21, 3  ;;  %p341_p6 = scmp.ge.s32.totalorder %s445_s20, 1 }
  0x14   : > { %p143_p7 = scmp.lt.s32.totalorder %s445_s20, 7 }
  0x15   : > { %s553_s21 = smov (%p30_p5, %s29_s21), 0  ;;  %s555_s22 = smov (!%p30_p5, %s32_s22), %s441_s0 }
  0x16   : > { %p144_p8 = pnand %p341_p6, %p143_p7  ;;  %p34_p9 = scmp.ge.s32.totalorder %s555_s22, 2 }
  0x17   : > { %s172_s23 = smul.u32 (!%p144_p8), 3, %s433_s18  ;;  %p182_p10 = scmp.lt.s32.totalorder (!%p144_p8), %s433_s18, 1 }
  0x18   : > { %s557_s22 = smov (%p34_p9, %s555_s22), 0  ;;  %147 = sbr.rel (%p144_p8) target bundleno = 54 (0x36), region = 24 }
  0x19   : > { %s173_s24 = sadd.s32 (!%p144_p8), %s429_s17, %s172_s23  ;;  %p346_p12 = scmp.ne.s32.totalorder (!%p144_p8), %s429_s17, 0 }
  0x1a   : > { %s342_s25 = sshll.u32 (!%p144_p8), %s173_s24, 2 }
  0x1b   : > { %p175_p11 = scmp.lt.s32.totalorder (!%p144_p8), %s342_s25, 23 }
  0x1f   : > { %s559_s18 = smov (!%p182_p10, %s433_s18), 1  ;;  %s561_s25 = smov (!%p175_p11, %s342_s25), 23 }
  0x20   : > { %s350_s26 = smul.u32 48, %s559_s18  ;;  %s343_s27 = sshll.u32 %s561_s25, 3  ;;  %v448_v0 = vmov (!%p346_p12), 0.0  }
  0x21   : > { %s178_s30 = scalar_lea.vmem %s545_s1, %s343_s27  ;;  %195 = sbr.rel (%p346_p12) target bundleno = 41 (0x29), region = 28 }
  0x22   : > { %s508_s6 = scalar_lea.vmem %s546_s2, %s350_s26  ;;  %s513_s9 = scalar_lea.vmem %s547_s3, %s350_s26 }
  0x23   : > { %196 = vst [vmem:[%s508_s6] sm:$0xff] (!%p346_p12), %v448_v0  ;;  %197 = vst [vmem:[%s508_s6 + $0x8] sm:$0xff] (!%p346_p12), %v448_v0 }
  0x24   : > { %198 = vst [vmem:[%s508_s6 + $0x10] sm:$0xff] (!%p346_p12), %v448_v0  ;;  %199 = vst [vmem:[%s508_s6 + $0x18] sm:$0xff] (!%p346_p12), %v448_v0 }
  0x25   : > { %200 = vst [vmem:[%s508_s6 + $0x20] sm:$0xff] (!%p346_p12), %v448_v0  ;;  %201 = vst [vmem:[%s508_s6 + $0x28] sm:$0xff] (!%p346_p12), %v448_v0 }
  0x26   : > { %202 = vst [vmem:[%s513_s9] sm:$0xff] (!%p346_p12), %v448_v0  ;;  %203 = vst [vmem:[%s513_s9 + $0x8] sm:$0xff] (!%p346_p12), %v448_v0 }
  0x27   : > { %204 = vst [vmem:[%s513_s9 + $0x10] sm:$0xff] (!%p346_p12), %v448_v0  ;;  %205 = vst [vmem:[%s513_s9 + $0x18] sm:$0xff] (!%p346_p12), %v448_v0 }
  0x28   : > { %206 = vst [vmem:[%s513_s9 + $0x20] sm:$0xff] %v448_v0  ;;  %207 = vst [vmem:[%s513_s9 + $0x28] sm:$0xff] %v448_v0 }
  0x29 PF: > { %s210_s10 = sld [smem:[#allocation3 + %s173_s24]]  ;;  %v211_v1 = vld [vmem:[%s178_s30] sm:$0xff]  ;;  %v212_v2 = vld [vmem:[%s178_s30 + $0x8] sm:$0xff]  ;;  %v213_v3 = vld [vmem:[%s178_s30 + $0x10] sm:$0xff] }
  0x2a   : > { %v214_v4 = vld [vmem:[%s178_s30 + $0x18] sm:$0xff]  ;;  %v215_v5 = vadd.f32 %v212_v2, %v211_v1  ;;  %v218_v6 = vmul.f32 %v211_v1, %v211_v1  ;;  %v219_v7 = vmul.f32 %v212_v2, %v212_v2  ;;  %v220_v8 = vmul.f32 %v213_v3, %v213_v3 }
  0x2b   : > { %v221_v10 = vmul.f32 %v214_v4, %v214_v4 }
  0x2c   : > { %v216_v9 = vadd.f32 %v215_v5, %v213_v3  ;;  %v222_v11 = vadd.f32 %v219_v7, %v218_v6 }
  0x2e   : > { %v217_v12 = vadd.f32 %v216_v9, %v214_v4  ;;  %v223_v13 = vadd.f32 %v222_v11, %v220_v8 }
  0x2f   : > { %s347_s11 = sshll.u32 %s210_s10, 3 }
  0x30   : > { %s226_s12 = scalar_lea.vmem %s508_s6, %s347_s11  ;;  %v224_v14 = vadd.f32 %v223_v13, %v221_v10  ;;  %s230_s13 = scalar_lea.vmem %s513_s9, %s347_s11 }
  0x31   : > { %v227_v15 = vld [vmem:[%s226_s12] sm:$0xff] }
  0x32   : > { %v231_v16 = vld [vmem:[%s230_s13] sm:$0xff]  ;;  %v228_v17 = vadd.f32 %v227_v15, %v217_v12 }
  0x33   : > { %v232_v18 = vadd.f32 %v231_v16, %v224_v14 }
  0x34   : > { %229 = vst [vmem:[%s226_s12] sm:$0xff] %v228_v17 }
  0x35   : > { %233 = vst [vmem:[%s230_s13] sm:$0xff] %v232_v18 }
  0x36 PF: > { %s20_s20 = sadd.s32 1, %s445_s20   ;;  %s548_s17 = smov %s437_s19 }
  0x37   : > { %p17_p13 = scmp.ge.s32.totalorder %s20_s20, 8   ;;  %s549_s18 = smov %s441_s0 }
  0x38   : > { %s550_s19 = smov %s553_s21  ;;  %s551_s0 = smov %s557_s22 }
  0x39   :  { %19 = sbr.rel (!%p17_p13) target bundleno = 18 (0x12), region = 72 }

</bundles_post_ra>
